<compile_context>
chip_gen: v6e
topology: v6e:2x2x1
jax: 0.10.0
libtpu: 0.0.40
codegen_flags: <defaults>
</compile_context>

<pallas_src>
import math
import numpy as np
import jax
import jax.numpy as jnp
from jax.experimental import pallas as pl
from jax.experimental.pallas import tpu as pltpu

IN_CH, OUT_CH, T_DIM = 4, 8, 32
N, H, W = 2, 16, 16
EPS = 1e-5


# ---------------- host-side constant folding (layout plumbing only, pure numpy) ----------------
def make_cat_band_matrix(k_hwio, width):
    """3x3 conv -> block-Toeplitz matrices concatenated over the vertical tap dy:
    returns (W*Cin, 3*W*Cout); horizontal zero-padding folded in."""
    kh, kw, cin, cout = k_hwio.shape
    k_np = np.asarray(k_hwio, np.float32)
    m = np.zeros((kh, width * cin, width * cout), np.float32)
    for dy in range(kh):
        for wo in range(width):
            for dx in range(kw):
                wi = wo + dx - 1
                if 0 <= wi < width:
                    m[dy, wi * cin:(wi + 1) * cin, wo * cout:(wo + 1) * cout] = k_np[dy, dx]
    return np.concatenate([m[0], m[1], m[2]], axis=1)          # (W*Cin, 3*W*Cout)


def make_replicate(c, width):
    """(C, W*C) matrix replicating a per-channel row across every width position."""
    r = np.zeros((c, width * c), np.float32)
    for w in range(width):
        r[:, w * c:(w + 1) * c] = np.eye(c, dtype=np.float32)
    return r


def _ceil8(x):
    return -(-x // 8) * 8


def build_const_slab(p, width):
    """Pack EVERY constant operand into one lane-dense (rows, 3*W*Cout) f32 slab."""
    cin, cout = p["conv1_w"].shape[2], p["conv1_w"].shape[3]
    t_dim = p["mlp_w1"].shape[0]
    l_in, l_out = width * cin, width * cout
    lanes = 3 * l_out
    pr0 = l_in + l_out                       # param rows start (192)
    wr0 = pr0 + 8                            # mlp_w1 rows start (200)
    wr1 = wr0 + _ceil8(t_dim)                # folded mlp_w2 rows start (232)
    rows = _ceil8(wr1 + _ceil8(cin))         # 240

    slab = np.zeros((rows, lanes), np.float32)
    slab[0:l_in, :] = make_cat_band_matrix(p["conv1_w"], width)
    slab[l_in:pr0, :] = make_cat_band_matrix(p["conv2_w"], width)

    tile = lambda a: np.tile(np.asarray(a, np.float32), width)
    slab[pr0 + 0, 0:l_out] = tile(p["conv1_b"])
    slab[pr0 + 1, 0:l_out] = tile(p["conv2_b"])
    slab[pr0 + 2, 0:l_out] = tile(p["bn1_g"])
    slab[pr0 + 3, 0:l_out] = tile(p["bn1_b"])
    slab[pr0 + 4, 0:l_out] = tile(p["bn2_g"])
    slab[pr0 + 5, 0:l_out] = tile(p["bn2_b"])
    slab[pr0 + 6, 0:cin] = np.asarray(p["mlp_b1"], np.float32)
    slab[pr0 + 7, 0:l_in] = tile(p["mlp_b2"])
    slab[wr0:wr0 + t_dim, 0:cin] = np.asarray(p["mlp_w1"], np.float32)
    # second MLP linear pre-folded with the per-lane channel replication
    slab[wr1:wr1 + cin, 0:l_in] = np.asarray(p["mlp_w2"], np.float32) @ make_replicate(cin, width)
    return jnp.asarray(slab), pr0, wr0, wr1


# ---------------- forward ----------------
def conv_block_forward(x_nchw, v, p):
    n, cin, h_img, w_img = x_nchw.shape
    cout = p["conv1_w"].shape[-1]
    t_dim = p["mlp_w1"].shape[0]
    nh, l_in, l_out = n * h_img, w_img * cin, w_img * cout
    inv_cnt = 1.0 / float(n * h_img * w_img)        # BN element count per channel
    assert (w_img & (w_img - 1)) == 0, "lane roll-add tree assumes W is a power of two"

    const_slab, pr0, wr0, wr1 = build_const_slab(p, w_img)

    # NCHW -> (N*H, W*Cin) slab, channels minor in the lane dim.
    # TODO(synk): at network level, keep activations in this slab layout across consecutive
    # ConvBlocks and do the NCHW<->slab transpose only once at the net boundary.
    x_rows = jnp.transpose(x_nchw, (0, 2, 3, 1)).reshape(nh, l_in)

    def kernel(x_ref, v_ref, c_ref, o_ref):
        # ---- constants: static windows into the single const slab ----
        mcat1 = c_ref[0:l_in, :]                         # (l_in, 3*l_out)
        mcat2 = c_ref[l_in:pr0, :]                       # (l_out, 3*l_out)
        b1c = c_ref[pr0 + 0:pr0 + 1, 0:l_out]
        b2c = c_ref[pr0 + 1:pr0 + 2, 0:l_out]
        g1 = c_ref[pr0 + 2:pr0 + 3, 0:l_out]
        be1 = c_ref[pr0 + 3:pr0 + 4, 0:l_out]
        g2 = c_ref[pr0 + 4:pr0 + 5, 0:l_out]
        be2 = c_ref[pr0 + 5:pr0 + 6, 0:l_out]
        mb1 = c_ref[pr0 + 6:pr0 + 7, 0:cin]
        mb2 = c_ref[pr0 + 7:pr0 + 8, 0:l_in]
        w1 = c_ref[wr0:wr0 + t_dim, 0:cin]               # (T, Cin)
        w2f = c_ref[wr1:wr1 + cin, 0:l_in]               # (Cin, l_in) = mlp_w2 @ replicate

        # ---- time-embedding MLP at M=N; broadcast each sample row over its H rows ----
        vh = jnp.maximum(
            jnp.dot(v_ref[...], w1, preferred_element_type=jnp.float32) + mb1, 0.0)
        vrep = jnp.dot(vh, w2f, preferred_element_type=jnp.float32) + mb2      # (N, l_in)
        x = x_ref[...]
        h0 = jnp.concatenate(
            [x[i * h_img:(i + 1) * h_img, :] + vrep[i:i + 1, :] for i in range(n)],
            axis=0)                                                            # (NH, l_in)

        # ---- vertical (= per-sample) boundary masks, shared by both convs ----
        row = jax.lax.broadcasted_iota(jnp.int32, (nh, l_out), 0)
        rmod = (jnp.bitwise_and(row, h_img - 1) if (h_img & (h_img - 1)) == 0
                else row % h_img)
        is_top = rmod == 0
        is_bot = rmod == h_img - 1

        def conv3(a, mcat, bias_row):
            # all three vertical taps in one MXU issue ...
            pp = jnp.dot(a, mcat, preferred_element_type=jnp.float32)          # (NH, 3*l_out)
            # ... then fold dy=0 / dy=2 back with sublane rolls (XLU) + boundary masks (VPU)
            acc = pp[:, l_out:2 * l_out] + bias_row
            acc = acc + jnp.where(is_top, 0.0,
                                  pltpu.roll(pp[:, 0:l_out], 1, axis=0))
            acc = acc + jnp.where(is_bot, 0.0,
                                  pltpu.roll(pp[:, 2 * l_out:3 * l_out], nh - 1, axis=0))
            return acc

        def lane_channel_sum(r1):
            # cyclic lane roll-add tree: channel index = lane % cout, so shifts
            # cout, 2*cout, ... give every lane its full per-channel sum.
            s = cout
            while s < l_out:
                r1 = r1 + pltpu.roll(r1, s, axis=1)
                s *= 2
            return r1

        def bn_relu(pre, g_row, be_row):
            # training-mode batch stats (biased variance), reductions on XLU/VPU only
            mean_l = lane_channel_sum(jnp.sum(pre, axis=0, keepdims=True)) * inv_cnt
            ex2_l = lane_channel_sum(jnp.sum(pre * pre, axis=0, keepdims=True)) * inv_cnt
            var_l = ex2_l - mean_l * mean_l
            scale_l = g_row * jax.lax.rsqrt(var_l + EPS)
            shift_l = be_row - mean_l * scale_l
            return jnp.maximum(pre * scale_l + shift_l, 0.0)

        h1 = bn_relu(conv3(h0, mcat1, b1c), g1, be1)
        h2 = bn_relu(conv3(h1, mcat2, b2c), g2, be2)
        o_ref[...] = h2                                   # single lane-dense (NH, 128) store

    flops = (2 * nh * l_in * 3 * l_out + 2 * nh * l_out * 3 * l_out
             + 2 * n * t_dim * cin + 2 * n * cin * l_in + 24 * nh * l_out)
    bytes_accessed = 4 * (nh * l_in + int(v.size) + int(const_slab.size) + nh * l_out)
    cost = pl.CostEstimate(flops=int(flops), transcendentals=2 * l_out,
                           bytes_accessed=int(bytes_accessed))

    vmem = lambda: pl.BlockSpec(memory_space=pltpu.MemorySpace.VMEM)
    out_rows = pl.pallas_call(
        kernel,
        out_shape=jax.ShapeDtypeStruct((nh, l_out), jnp.float32),
        in_specs=[vmem(), vmem(), vmem()],
        out_specs=vmem(),
        cost_estimate=cost,
    )(x_rows, v, const_slab)

    y = out_rows.reshape(n, h_img, w_img, cout)
    return jnp.transpose(y, (0, 3, 1, 2))                 # back to NCHW


# ---------------- params / reference ----------------
def init_params(key, in_ch, out_ch, t_dim):
    ks = jax.random.split(key, 8)

    def u(k, shape, fan_in):
        b = 1.0 / math.sqrt(fan_in)
        return jax.random.uniform(k, shape, jnp.float32, -b, b)

    return {
        "conv1_w": u(ks[0], (3, 3, in_ch, out_ch), in_ch * 9),   # HWIO
        "conv1_b": u(ks[1], (out_ch,), in_ch * 9),
        "conv2_w": u(ks[2], (3, 3, out_ch, out_ch), out_ch * 9),
        "conv2_b": u(ks[3], (out_ch,), out_ch * 9),
        "mlp_w1": u(ks[4], (t_dim, in_ch), t_dim),               # (in_features, out_features)
        "mlp_b1": u(ks[5], (in_ch,), t_dim),
        "mlp_w2": u(ks[6], (in_ch, in_ch), in_ch),
        "mlp_b2": u(ks[7], (in_ch,), in_ch),
        "bn1_g": jnp.ones((out_ch,), jnp.float32),
        "bn1_b": jnp.zeros((out_ch,), jnp.float32),
        "bn2_g": jnp.ones((out_ch,), jnp.float32),
        "bn2_b": jnp.zeros((out_ch,), jnp.float32),
    }


def reference_forward(x_nchw, v, p):
    vh = jnp.maximum(v @ p["mlp_w1"] + p["mlp_b1"], 0.0)
    vemb = vh @ p["mlp_w2"] + p["mlp_b2"]
    h = x_nchw + vemb[:, :, None, None]
    h = jnp.transpose(h, (0, 2, 3, 1))   # NHWC

    def conv_bn_relu(h, w, b, g, be):
        y = jax.lax.conv_general_dilated(
            h, w, (1, 1), ((1, 1), (1, 1)),
            dimension_numbers=("NHWC", "HWIO", "NHWC"),
            precision=jax.lax.Precision.HIGHEST) + b
        m = jnp.mean(y, axis=(0, 1, 2), keepdims=True)
        var = jnp.mean((y - m) ** 2, axis=(0, 1, 2), keepdims=True)
        return jnp.maximum((y - m) * jax.lax.rsqrt(var + EPS) * g + be, 0.0)

    h = conv_bn_relu(h, p["conv1_w"], p["conv1_b"], p["bn1_g"], p["bn1_b"])
    h = conv_bn_relu(h, p["conv2_w"], p["conv2_b"], p["bn2_g"], p["bn2_b"])
    return jnp.transpose(h, (0, 3, 1, 2))


if __name__ == "__main__":
    key = jax.random.PRNGKey(0)
    kp, kx, kv = jax.random.split(key, 3)
    params = init_params(kp, IN_CH, OUT_CH, T_DIM)
    x = jax.random.normal(kx, (N, IN_CH, H, W), jnp.float32)
    v = jax.random.normal(kv, (N, T_DIM), jnp.float32)

    y = jax.block_until_ready(conv_block_forward(x, v, params))
    assert y.shape == (N, OUT_CH, H, W)

    y_ref = jax.block_until_ready(reference_forward(x, v, params))
    max_err = float(jnp.max(jnp.abs(y - y_ref)))
    if max_err > 5e-3:
        raise AssertionError(f"mismatch vs reference: max abs err {max_err}")
    print("KERNEL_OK")
</pallas_src>

<mosaic_0001>
module attributes {stable_mosaic.version = 11 : i64} {
  func.func @kernel(%arg0: memref<32x64xf32, #tpu.memory_space<vmem>>, %arg1: memref<2x32xf32, #tpu.memory_space<vmem>>, %arg2: memref<240x384xf32, #tpu.memory_space<vmem>>, %arg3: memref<32x128xf32, #tpu.memory_space<vmem>>) attributes {dimension_semantics = [], scalar_prefetch = 0 : i64, scratch_operands = 0 : i64, tpu.core_type = #tpu.core_type<tc>} {
    %c0 = arith.constant 0 : index
    %c0_0 = arith.constant 0 : index
    %0 = vector.load %arg2[%c0, %c0_0] : memref<240x384xf32, #tpu.memory_space<vmem>>, vector<64x384xf32>
    %c64 = arith.constant 64 : index
    %c0_1 = arith.constant 0 : index
    %1 = vector.load %arg2[%c64, %c0_1] : memref<240x384xf32, #tpu.memory_space<vmem>>, vector<128x384xf32>
    %c192 = arith.constant 192 : index
    %c0_2 = arith.constant 0 : index
    %2 = vector.load %arg2[%c192, %c0_2] : memref<240x384xf32, #tpu.memory_space<vmem>>, vector<1x128xf32>
    %c193 = arith.constant 193 : index
    %c0_3 = arith.constant 0 : index
    %3 = vector.load %arg2[%c193, %c0_3] : memref<240x384xf32, #tpu.memory_space<vmem>>, vector<1x128xf32>
    %c194 = arith.constant 194 : index
    %c0_4 = arith.constant 0 : index
    %4 = vector.load %arg2[%c194, %c0_4] : memref<240x384xf32, #tpu.memory_space<vmem>>, vector<1x128xf32>
    %c195 = arith.constant 195 : index
    %c0_5 = arith.constant 0 : index
    %5 = vector.load %arg2[%c195, %c0_5] : memref<240x384xf32, #tpu.memory_space<vmem>>, vector<1x128xf32>
    %c196 = arith.constant 196 : index
    %c0_6 = arith.constant 0 : index
    %6 = vector.load %arg2[%c196, %c0_6] : memref<240x384xf32, #tpu.memory_space<vmem>>, vector<1x128xf32>
    %c197 = arith.constant 197 : index
    %c0_7 = arith.constant 0 : index
    %7 = vector.load %arg2[%c197, %c0_7] : memref<240x384xf32, #tpu.memory_space<vmem>>, vector<1x128xf32>
    %c198 = arith.constant 198 : index
    %c0_8 = arith.constant 0 : index
    %8 = vector.load %arg2[%c198, %c0_8] : memref<240x384xf32, #tpu.memory_space<vmem>>, vector<1x4xf32>
    %c199 = arith.constant 199 : index
    %c0_9 = arith.constant 0 : index
    %9 = vector.load %arg2[%c199, %c0_9] : memref<240x384xf32, #tpu.memory_space<vmem>>, vector<1x64xf32>
    %c200 = arith.constant 200 : index
    %c0_10 = arith.constant 0 : index
    %10 = vector.load %arg2[%c200, %c0_10] : memref<240x384xf32, #tpu.memory_space<vmem>>, vector<32x4xf32>
    %c232 = arith.constant 232 : index
    %c0_11 = arith.constant 0 : index
    %11 = vector.load %arg2[%c232, %c0_11] : memref<240x384xf32, #tpu.memory_space<vmem>>, vector<4x64xf32>
    %c0_12 = arith.constant 0 : index
    %c0_13 = arith.constant 0 : index
    %12 = vector.load %arg1[%c0_12, %c0_13] : memref<2x32xf32, #tpu.memory_space<vmem>>, vector<2x32xf32>
    %cst = arith.constant dense<0.000000e+00> : vector<2x4xf32>
    %13 = tpu.matmul %12, %10, %cst {dimension_numbers = #tpu.dot_dimension_numbers<[1], [0], [0], [1], [0, 0, 1, 1], [], []>} : vector<2x32xf32>, vector<32x4xf32>, vector<2x4xf32> -> vector<2x4xf32>
    %14 = vector.broadcast %8 : vector<1x4xf32> to vector<2x4xf32>
    %15 = arith.addf %13, %14 : vector<2x4xf32>
    %cst_14 = arith.constant 0.000000e+00 : f32
    %16 = vector.broadcast %cst_14 : f32 to vector<2x4xf32>
    %17 = arith.maximumf %15, %16 : vector<2x4xf32>
    %cst_15 = arith.constant dense<0.000000e+00> : vector<2x64xf32>
    %18 = tpu.matmul %17, %11, %cst_15 {dimension_numbers = #tpu.dot_dimension_numbers<[1], [0], [0], [1], [0, 0, 1, 1], [], []>} : vector<2x4xf32>, vector<4x64xf32>, vector<2x64xf32> -> vector<2x64xf32>
    %19 = vector.broadcast %9 : vector<1x64xf32> to vector<2x64xf32>
    %20 = arith.addf %18, %19 : vector<2x64xf32>
    %c0_16 = arith.constant 0 : index
    %c0_17 = arith.constant 0 : index
    %21 = vector.load %arg0[%c0_16, %c0_17] : memref<32x64xf32, #tpu.memory_space<vmem>>, vector<32x64xf32>
    %22 = vector.extract_strided_slice %21 {offsets = [0, 0], sizes = [16, 64], strides = [1, 1]} : vector<32x64xf32> to vector<16x64xf32>
    %23 = vector.extract_strided_slice %20 {offsets = [0, 0], sizes = [1, 64], strides = [1, 1]} : vector<2x64xf32> to vector<1x64xf32>
    %24 = vector.broadcast %23 : vector<1x64xf32> to vector<16x64xf32>
    %25 = arith.addf %22, %24 : vector<16x64xf32>
    %26 = vector.extract_strided_slice %21 {offsets = [16, 0], sizes = [16, 64], strides = [1, 1]} : vector<32x64xf32> to vector<16x64xf32>
    %27 = vector.extract_strided_slice %20 {offsets = [1, 0], sizes = [1, 64], strides = [1, 1]} : vector<2x64xf32> to vector<1x64xf32>
    %28 = vector.broadcast %27 : vector<1x64xf32> to vector<16x64xf32>
    %29 = arith.addf %26, %28 : vector<16x64xf32>
    %30 = tpu.concatenate %25, %29 in 0 : vector<16x64xf32>, vector<16x64xf32> -> vector<32x64xf32>
    %31 = tpu.iota {dimensions = array<i32: 0>} : vector<32x128xi32>
    %c15_i32 = arith.constant 15 : i32
    %32 = vector.broadcast %c15_i32 : i32 to vector<32x128xi32>
    %33 = arith.andi %31, %32 : vector<32x128xi32>
    %c0_i32 = arith.constant 0 : i32
    %34 = vector.broadcast %c0_i32 : i32 to vector<32x128xi32>
    %35 = arith.cmpi eq, %33, %34 : vector<32x128xi32>
    %c15_i32_18 = arith.constant 15 : i32
    %36 = vector.broadcast %c15_i32_18 : i32 to vector<32x128xi32>
    %37 = arith.cmpi eq, %33, %36 : vector<32x128xi32>
    %cst_19 = arith.constant dense<0.000000e+00> : vector<32x384xf32>
    %38 = tpu.matmul %30, %0, %cst_19 {dimension_numbers = #tpu.dot_dimension_numbers<[1], [0], [0], [1], [0, 0, 1, 1], [], []>} : vector<32x64xf32>, vector<64x384xf32>, vector<32x384xf32> -> vector<32x384xf32>
    %39 = vector.extract_strided_slice %38 {offsets = [0, 128], sizes = [32, 128], strides = [1, 1]} : vector<32x384xf32> to vector<32x128xf32>
    %40 = vector.broadcast %2 : vector<1x128xf32> to vector<32x128xf32>
    %41 = arith.addf %39, %40 : vector<32x128xf32>
    %42 = vector.extract_strided_slice %38 {offsets = [0, 0], sizes = [32, 128], strides = [1, 1]} : vector<32x384xf32> to vector<32x128xf32>
    %c1_i32 = arith.constant 1 : i32
    %43 = tpu.dynamic_rotate %42 by %c1_i32 dim 0 : vector<32x128xf32>, i32 -> vector<32x128xf32>
    %cst_20 = arith.constant 0.000000e+00 : f32
    %44 = vector.broadcast %cst_20 : f32 to vector<32x128xf32>
    %45 = arith.select %35, %44, %43 : vector<32x128xi1>, vector<32x128xf32>
    %46 = arith.addf %41, %45 : vector<32x128xf32>
    %47 = vector.extract_strided_slice %38 {offsets = [0, 256], sizes = [32, 128], strides = [1, 1]} : vector<32x384xf32> to vector<32x128xf32>
    %c31_i32 = arith.constant 31 : i32
    %48 = tpu.dynamic_rotate %47 by %c31_i32 dim 0 : vector<32x128xf32>, i32 -> vector<32x128xf32>
    %cst_21 = arith.constant 0.000000e+00 : f32
    %49 = vector.broadcast %cst_21 : f32 to vector<32x128xf32>
    %50 = arith.select %37, %49, %48 : vector<32x128xi1>, vector<32x128xf32>
    %51 = arith.addf %46, %50 : vector<32x128xf32>
    %cst_22 = arith.constant dense<0.000000e+00> : vector<128xf32>
    %52 = vector.multi_reduction <add>, %51, %cst_22 [0] : vector<32x128xf32> to vector<128xf32>
    %53 = vector.shape_cast %52 : vector<128xf32> to vector<1x128xf32>
    %c8_i32 = arith.constant 8 : i32
    %54 = tpu.dynamic_rotate %53 by %c8_i32 dim 1 : vector<1x128xf32>, i32 -> vector<1x128xf32>
    %55 = arith.addf %53, %54 : vector<1x128xf32>
    %c16_i32 = arith.constant 16 : i32
    %56 = tpu.dynamic_rotate %55 by %c16_i32 dim 1 : vector<1x128xf32>, i32 -> vector<1x128xf32>
    %57 = arith.addf %55, %56 : vector<1x128xf32>
    %c32_i32 = arith.constant 32 : i32
    %58 = tpu.dynamic_rotate %57 by %c32_i32 dim 1 : vector<1x128xf32>, i32 -> vector<1x128xf32>
    %59 = arith.addf %57, %58 : vector<1x128xf32>
    %c64_i32 = arith.constant 64 : i32
    %60 = tpu.dynamic_rotate %59 by %c64_i32 dim 1 : vector<1x128xf32>, i32 -> vector<1x128xf32>
    %61 = arith.addf %59, %60 : vector<1x128xf32>
    %cst_23 = arith.constant 0.001953125 : f32
    %62 = vector.broadcast %cst_23 : f32 to vector<1x128xf32>
    %63 = arith.mulf %61, %62 : vector<1x128xf32>
    %64 = arith.mulf %51, %51 : vector<32x128xf32>
    %cst_24 = arith.constant dense<0.000000e+00> : vector<128xf32>
    %65 = vector.multi_reduction <add>, %64, %cst_24 [0] : vector<32x128xf32> to vector<128xf32>
    %66 = vector.shape_cast %65 : vector<128xf32> to vector<1x128xf32>
    %c8_i32_25 = arith.constant 8 : i32
    %67 = tpu.dynamic_rotate %66 by %c8_i32_25 dim 1 : vector<1x128xf32>, i32 -> vector<1x128xf32>
    %68 = arith.addf %66, %67 : vector<1x128xf32>
    %c16_i32_26 = arith.constant 16 : i32
    %69 = tpu.dynamic_rotate %68 by %c16_i32_26 dim 1 : vector<1x128xf32>, i32 -> vector<1x128xf32>
    %70 = arith.addf %68, %69 : vector<1x128xf32>
    %c32_i32_27 = arith.constant 32 : i32
    %71 = tpu.dynamic_rotate %70 by %c32_i32_27 dim 1 : vector<1x128xf32>, i32 -> vector<1x128xf32>
    %72 = arith.addf %70, %71 : vector<1x128xf32>
    %c64_i32_28 = arith.constant 64 : i32
    %73 = tpu.dynamic_rotate %72 by %c64_i32_28 dim 1 : vector<1x128xf32>, i32 -> vector<1x128xf32>
    %74 = arith.addf %72, %73 : vector<1x128xf32>
    %cst_29 = arith.constant 0.001953125 : f32
    %75 = vector.broadcast %cst_29 : f32 to vector<1x128xf32>
    %76 = arith.mulf %74, %75 : vector<1x128xf32>
    %77 = arith.mulf %63, %63 : vector<1x128xf32>
    %78 = arith.subf %76, %77 : vector<1x128xf32>
    %cst_30 = arith.constant 9.99999974E-6 : f32
    %79 = vector.broadcast %cst_30 : f32 to vector<1x128xf32>
    %80 = arith.addf %78, %79 : vector<1x128xf32>
    %81 = math.rsqrt %80 : vector<1x128xf32>
    %82 = arith.mulf %4, %81 : vector<1x128xf32>
    %83 = arith.mulf %63, %82 : vector<1x128xf32>
    %84 = arith.subf %5, %83 : vector<1x128xf32>
    %85 = vector.broadcast %82 : vector<1x128xf32> to vector<32x128xf32>
    %86 = arith.mulf %51, %85 : vector<32x128xf32>
    %87 = vector.broadcast %84 : vector<1x128xf32> to vector<32x128xf32>
    %88 = arith.addf %86, %87 : vector<32x128xf32>
    %cst_31 = arith.constant 0.000000e+00 : f32
    %89 = vector.broadcast %cst_31 : f32 to vector<32x128xf32>
    %90 = arith.maximumf %88, %89 : vector<32x128xf32>
    %cst_32 = arith.constant dense<0.000000e+00> : vector<32x384xf32>
    %91 = tpu.matmul %90, %1, %cst_32 {dimension_numbers = #tpu.dot_dimension_numbers<[1], [0], [0], [1], [0, 0, 1, 1], [], []>} : vector<32x128xf32>, vector<128x384xf32>, vector<32x384xf32> -> vector<32x384xf32>
    %92 = vector.extract_strided_slice %91 {offsets = [0, 128], sizes = [32, 128], strides = [1, 1]} : vector<32x384xf32> to vector<32x128xf32>
    %93 = vector.broadcast %3 : vector<1x128xf32> to vector<32x128xf32>
    %94 = arith.addf %92, %93 : vector<32x128xf32>
    %95 = vector.extract_strided_slice %91 {offsets = [0, 0], sizes = [32, 128], strides = [1, 1]} : vector<32x384xf32> to vector<32x128xf32>
    %c1_i32_33 = arith.constant 1 : i32
    %96 = tpu.dynamic_rotate %95 by %c1_i32_33 dim 0 : vector<32x128xf32>, i32 -> vector<32x128xf32>
    %cst_34 = arith.constant 0.000000e+00 : f32
    %97 = vector.broadcast %cst_34 : f32 to vector<32x128xf32>
    %98 = arith.select %35, %97, %96 : vector<32x128xi1>, vector<32x128xf32>
    %99 = arith.addf %94, %98 : vector<32x128xf32>
    %100 = vector.extract_strided_slice %91 {offsets = [0, 256], sizes = [32, 128], strides = [1, 1]} : vector<32x384xf32> to vector<32x128xf32>
    %c31_i32_35 = arith.constant 31 : i32
    %101 = tpu.dynamic_rotate %100 by %c31_i32_35 dim 0 : vector<32x128xf32>, i32 -> vector<32x128xf32>
    %cst_36 = arith.constant 0.000000e+00 : f32
    %102 = vector.broadcast %cst_36 : f32 to vector<32x128xf32>
    %103 = arith.select %37, %102, %101 : vector<32x128xi1>, vector<32x128xf32>
    %104 = arith.addf %99, %103 : vector<32x128xf32>
    %cst_37 = arith.constant dense<0.000000e+00> : vector<128xf32>
    %105 = vector.multi_reduction <add>, %104, %cst_37 [0] : vector<32x128xf32> to vector<128xf32>
    %106 = vector.shape_cast %105 : vector<128xf32> to vector<1x128xf32>
    %c8_i32_38 = arith.constant 8 : i32
    %107 = tpu.dynamic_rotate %106 by %c8_i32_38 dim 1 : vector<1x128xf32>, i32 -> vector<1x128xf32>
    %108 = arith.addf %106, %107 : vector<1x128xf32>
    %c16_i32_39 = arith.constant 16 : i32
    %109 = tpu.dynamic_rotate %108 by %c16_i32_39 dim 1 : vector<1x128xf32>, i32 -> vector<1x128xf32>
    %110 = arith.addf %108, %109 : vector<1x128xf32>
    %c32_i32_40 = arith.constant 32 : i32
    %111 = tpu.dynamic_rotate %110 by %c32_i32_40 dim 1 : vector<1x128xf32>, i32 -> vector<1x128xf32>
    %112 = arith.addf %110, %111 : vector<1x128xf32>
    %c64_i32_41 = arith.constant 64 : i32
    %113 = tpu.dynamic_rotate %112 by %c64_i32_41 dim 1 : vector<1x128xf32>, i32 -> vector<1x128xf32>
    %114 = arith.addf %112, %113 : vector<1x128xf32>
    %cst_42 = arith.constant 0.001953125 : f32
    %115 = vector.broadcast %cst_42 : f32 to vector<1x128xf32>
    %116 = arith.mulf %114, %115 : vector<1x128xf32>
    %117 = arith.mulf %104, %104 : vector<32x128xf32>
    %cst_43 = arith.constant dense<0.000000e+00> : vector<128xf32>
    %118 = vector.multi_reduction <add>, %117, %cst_43 [0] : vector<32x128xf32> to vector<128xf32>
    %119 = vector.shape_cast %118 : vector<128xf32> to vector<1x128xf32>
    %c8_i32_44 = arith.constant 8 : i32
    %120 = tpu.dynamic_rotate %119 by %c8_i32_44 dim 1 : vector<1x128xf32>, i32 -> vector<1x128xf32>
    %121 = arith.addf %119, %120 : vector<1x128xf32>
    %c16_i32_45 = arith.constant 16 : i32
    %122 = tpu.dynamic_rotate %121 by %c16_i32_45 dim 1 : vector<1x128xf32>, i32 -> vector<1x128xf32>
    %123 = arith.addf %121, %122 : vector<1x128xf32>
    %c32_i32_46 = arith.constant 32 : i32
    %124 = tpu.dynamic_rotate %123 by %c32_i32_46 dim 1 : vector<1x128xf32>, i32 -> vector<1x128xf32>
    %125 = arith.addf %123, %124 : vector<1x128xf32>
    %c64_i32_47 = arith.constant 64 : i32
    %126 = tpu.dynamic_rotate %125 by %c64_i32_47 dim 1 : vector<1x128xf32>, i32 -> vector<1x128xf32>
    %127 = arith.addf %125, %126 : vector<1x128xf32>
    %cst_48 = arith.constant 0.001953125 : f32
    %128 = vector.broadcast %cst_48 : f32 to vector<1x128xf32>
    %129 = arith.mulf %127, %128 : vector<1x128xf32>
    %130 = arith.mulf %116, %116 : vector<1x128xf32>
    %131 = arith.subf %129, %130 : vector<1x128xf32>
    %cst_49 = arith.constant 9.99999974E-6 : f32
    %132 = vector.broadcast %cst_49 : f32 to vector<1x128xf32>
    %133 = arith.addf %131, %132 : vector<1x128xf32>
    %134 = math.rsqrt %133 : vector<1x128xf32>
    %135 = arith.mulf %6, %134 : vector<1x128xf32>
    %136 = arith.mulf %116, %135 : vector<1x128xf32>
    %137 = arith.subf %7, %136 : vector<1x128xf32>
    %138 = vector.broadcast %135 : vector<1x128xf32> to vector<32x128xf32>
    %139 = arith.mulf %104, %138 : vector<32x128xf32>
    %140 = vector.broadcast %137 : vector<1x128xf32> to vector<32x128xf32>
    %141 = arith.addf %139, %140 : vector<32x128xf32>
    %cst_50 = arith.constant 0.000000e+00 : f32
    %142 = vector.broadcast %cst_50 : f32 to vector<32x128xf32>
    %143 = arith.maximumf %141, %142 : vector<32x128xf32>
    %c0_51 = arith.constant 0 : index
    %c0_52 = arith.constant 0 : index
    %144 = vector.load %arg3[%c0_51, %c0_52] : memref<32x128xf32, #tpu.memory_space<vmem>>, vector<32x128xf32>
    tpu.vector_store %arg3[%c0_51, %c0_52], %143 {strides = array<i32>} : memref<32x128xf32, #tpu.memory_space<vmem>>, vector<32x128xf32>,
    return
  }
}

</mosaic_0001>

<bundles_post_ra>
// kernel: tpu_custom_call.1
= control target key start
LH: loop header
LB: loop body
LE: loop exit
PB: predicated region body
PF: predicated region fallthrough
CT: control target
= control target key end

     0   :  { %8 = vsyncpa [#allocation3], 0  ;;  %s1377_s0 = inlined_call_operand.hbm [shape: f32[32,64], index: 0, kind: input, shape index: {}]   ;;  %s1378_s1 = inlined_call_operand.hbm [shape: f32[2,32], index: 1, kind: input, shape index: {}]   ;;  %s1379_s2 = inlined_call_operand.hbm [shape: f32[240,384], index: 2, kind: input, shape index: {}]   ;;  %s1380_s3 = inlined_call_operand.hbm [shape: f32[32,128], index: 3, kind: output, shape index: {}]  }
   0x1   :  { %9 = vsyncpa [#allocation6], 0 }
   0x2   :  { %10 = vsyncpa [#allocation4], 0  ;;  %s1162_s12 = smov [#allocation5]   ;;  %s1163_s14 = smov [#allocation2]  }
   0x3   :  { %s29_s13 = sshll.u32 %s1162_s12, 4  ;;  %s16_s15 = sshll.u32 %s1163_s14, 4  ;;  %s30_s13 = int_to_ptr.vmem [resolvable:$true] %s29_s13  ;;  %s17_s15 = int_to_ptr.vmem [resolvable:$true] %s16_s15 }
   0x4   :  { %s1084_s16 = scalar_lea.vmem %s30_s13, 32  ;;  %p1089_p1 = scmp.lt.s32.totalorder %s30_s13, %s30_s13 }
   0x5   :  { %p1085_p0 = scmp.ne.s32.totalorder %s30_s13, %s1084_s16  ;;  %p1090_p2 = scmp.lt.s32.totalorder %s1084_s16, %s1084_s16 }
   0x7   :  { %p1091_p3 = por %p1090_p2, %p1089_p1 }
   0x9   :  { %p1092_p4 = pnand %p1091_p3, %p1085_p0 }
   0xb   :  { %1095 = shalt.err (!%p1092_p4)
}
   0xc   :  { %32 = dma.hbm_to_vmem [thread:$0]  %s1378_s1, 32, %s30_s13, [#allocation6]  }
   0xd   :  { %s1104_s19 = scalar_lea.vmem %s17_s15, 512  ;;  %p1109_p6 = scmp.lt.s32.totalorder %s17_s15, %s17_s15 }
   0xe   :  { %p1105_p5 = scmp.ne.s32.totalorder %s17_s15, %s1104_s19  ;;  %p1110_p7 = scmp.lt.s32.totalorder %s1104_s19, %s1104_s19 }
  0x10   :  { %p1111_p8 = por %p1110_p7, %p1109_p6 }
  0x12   :  { %p1112_p9 = pnand %p1111_p8, %p1105_p5 }
  0x14   :  { %1115 = shalt.err (!%p1112_p9)
}
  0x15   :  { %s1164_s20 = smov 128   ;;  %s1165_s21 = smov 8  }
  0x16   :  { %22 = dma.hbm_to_vmem [thread:$0]  %s1377_s0, 512, %s17_s15, [#allocation3], %s1164_s20, %s1164_s20, %s1165_s21  }
  0x17   :  { %s1166_s24 = smov [#allocation7]  }
  0x18   :  { %s38_s25 = sshll.u32 %s1166_s24, 4  ;;  %s39_s25 = int_to_ptr.vmem [resolvable:$true] %s38_s25 }
  0x19   :  { %s1124_s1 = scalar_lea.vmem %s39_s25, 11520  ;;  %p1129_p11 = scmp.lt.s32.totalorder %s39_s25, %s39_s25 }
  0x1a   :  { %p1125_p10 = scmp.ne.s32.totalorder %s39_s25, %s1124_s1  ;;  %p1130_p12 = scmp.lt.s32.totalorder %s1124_s1, %s1124_s1 }
  0x1c   :  { %p1131_p13 = por %p1130_p12, %p1129_p11 }
  0x1e   :  { %p1132_p0 = pnand %p1131_p13, %p1125_p10 }
  0x20   :  { %1135 = shalt.err (!%p1132_p0)
}
  0x21   :  { %s1167_s26 = smov 384   ;;  %s1168_s27 = smov 24  }
  0x22   :  { %44 = dma.hbm_to_vmem [thread:$0]  %s1379_s2, 11520, %s39_s25, [#allocation6], %s1167_s26, %s1167_s26, %s1168_s27  }
  0x23   :  { %1156 = dma.done.wait [#allocation3], 512  }
  0x24   :  { %1157 = vsyncadd [#allocation3], 4294966784 }
  0x25   :  { %1158 = dma.done.wait [#allocation6], 11552  }
  0x26   :  { %1159 = vsyncadd [#allocation6], 4294955744  ;;  %v1169_v0 = vmov 0.0   ;;  %vm1170_vm0 = vmmov 0   ;;  %v137_v1 = vld [vmem:[#allocation7 + $0x2a0] sm:$0xff]  ;;  %v136_v2 = vld [vmem:[#allocation7 + $0x288] sm:$0xff]  ;;  %v297_v36 = vlaneseq }
  0x27   :  { %983 = vmatprep.subr.mxu0 %v1169_v0  ;;  %991 = vmatprep.mubr.msk.f32.mxu0 %vm1170_vm0, %v1169_v0  ;;  %v135_v3 = vld [vmem:[#allocation7 + $0x270] sm:$0xff]  ;;  %v134_v4 = vld [vmem:[#allocation7 + $0x258] sm:$0xff]  ;;  %vm140_vm1 = vcmask 261120   ;;  %vm219_vm2 = vcmask 1043456   ;;  %v74_v9 = vld [vmem:[#allocation7 + $0xa0] sm:$0xff]  ;;  %vm215_vm3 = vcmask 31744  }
  0x28   :  { %994 = vmatprep.subr.mxu1 %v1169_v0  ;;  %996 = vmatprep.mubr.msk.f32.mxu1 %vm1170_vm0, %v1169_v0  ;;  %v139_v5 = vld [vmem:[#allocation5] sm:$0x3]  ;;  %v138_v6 = vld [vmem:[#allocation7 + $0x2b8] sm:$0xf]  ;;  %v76_v7 = vld [vmem:[#allocation7 + $0xb0] sm:$0xff]  ;;  %v1215_v37 = vshrl.u32 %v297_v36, 7 }
  0x29   :  { %984 = vmatpush3.msra.mxu0 %v137_v1  ;;  %995 = vmatpush3.msk.msra.mxu1 %vm219_vm2, %v138_v6  ;;  %v77_v8 = vld [vmem:[#allocation7 + $0xb8] sm:$0xff]  ;;  %v71_v10 = vld [vmem:[#allocation7 + $0x88] sm:$0xff]  ;;  %v68_v11 = vld [vmem:[#allocation7 + $0x70] sm:$0xff]  ;;  %vm326_vm4 = vcmask 523264   ;;  %s1171_s0 = smov 16   ;;  %s1172_s2 = smov 32  }
  0x2a   :  { %985 = vmatprep.subr.mxu0 %v1169_v0  ;;  %355 = vmatprep.subr.mxu1 %v76_v7  ;;  %v132_v12 = vld [vmem:[#allocation7 + $0x246] ss:$0 sm:$0xff]  ;;  %v75_v17 = vld [vmem:[#allocation7 + $0xa8] sm:$0xff]  ;;  %v73_v18 = vld [vmem:[#allocation7 + $0x98] sm:$0xff]  ;;  %v1218_v39 = vsub.s32 0, %v1215_v37  ;;  %v305_v40 = vsub.s32 1, %v1215_v37 }
  0x2b   :  { %986 = vmatpush3.msra.mxu0 %v136_v2  ;;  %v72_v19 = vld [vmem:[#allocation7 + $0x90] sm:$0xff]  ;;  %v70_v20 = vld [vmem:[#allocation7 + $0x80] sm:$0xff]  ;;  %v69_v21 = vld [vmem:[#allocation7 + $0x78] sm:$0xff]  ;;  %v312_v55 = vadd.s32 16, %v1215_v37  ;;  %v311_v59 = vadd.s32 8, %v1215_v37  ;;  %vm521_vm5 = vcmp.lt.s32.totalorder %v1215_v37, 1 }
  0x2c   :  { %987 = vmatprep.subr.mxu0 %v1169_v0  ;;  %v67_v22 = vld [vmem:[#allocation7 + $0x68] sm:$0xff]  ;;  %v66_v23 = vld [vmem:[#allocation7 + $0x60] sm:$0xff]  ;;  %v64_v24 = vld [vmem:[#allocation7 + $0x50] sm:$0xff]  ;;  %vm538_vm7 = vcmp.lt.s32.totalorder %v1215_v37, 7  ;;  %s1173_s30 = smov 64   ;;  %s1174_s4 = smov [#allocation8]  }
  0x2d   :  { %988 = vmatpush3.msra.mxu0 %v135_v3  ;;  %v63_v25 = vld [vmem:[#allocation7 + $0x48] sm:$0xff]  ;;  %v65_v26 = vld [vmem:[#allocation7 + $0x58] sm:$0xff]  ;;  %v60_v28 = vld [vmem:[#allocation7 + $0x30] sm:$0xff]  ;;  %v316_v61 = vand.u32 15, %v312_v55  ;;  %v315_v2 = vand.u32 15, %v311_v59  ;;  %s920_s5 = sshll.u32 %s1174_s4, 4  ;;  %s921_s5 = int_to_ptr.vmem [resolvable:$true] %s920_s5 }
  0x2e   :  { %989 = vmatprep.subr.mxu0 %v1169_v0  ;;  %v61_v27 = vld [vmem:[#allocation7 + $0x38] sm:$0xff]  ;;  %v62_v29 = vld [vmem:[#allocation7 + $0x40] sm:$0xff]  ;;  %v59_v32 = vld [vmem:[#allocation7 + $0x28] sm:$0xff]  ;;  %s1136_s6 = scalar_lea.vmem %s921_s5, 512  ;;  %p1141_p2 = scmp.lt.s32.totalorder %s921_s5, %s921_s5 }
  0x2f   :  { %990 = vmatpush3.msra.mxu0 %v134_v4  ;;  %v58_v30 = vld [vmem:[#allocation7 + $0x20] sm:$0xff]  ;;  %v57_v31 = vld [vmem:[#allocation7 + $0x18] sm:$0xff]  ;;  %v55_v33 = vld [vmem:[#allocation7 + $0x8] sm:$0xff]  ;;  %vm1237_vm6 = vcmp.eq.s32.totalorder %v316_v61, 0  ;;  %vm1246_vm8 = vcmp.eq.s32.totalorder %v315_v2, 15  ;;  %p1137_p1 = scmp.ne.s32.totalorder %s921_s5, %s1136_s6  ;;  %p1142_p3 = scmp.lt.s32.totalorder %s1136_s6, %s1136_s6 }
  0x30   :  { %992 = vmatmul.mubr.msk.f32.vlgmr.msra.gmra.mxu0 %vm140_vm1, %v139_v5  ;;  %999 = vmatprep.subr.mxu0 %v77_v8  ;;  %v54_v34 = vld [vmem:[#allocation7] sm:$0xff]  ;;  %v56_v35 = vld [vmem:[#allocation7 + $0x10] sm:$0xff] }
  0x31   :  { %1000 = vmatpush3.msra.mxu0 %v77_v8  ;;  %v133_v38 = vld [vmem:[#allocation7 + $0x247] ss:$0 sm:$0xff]  ;;  %v293_v43 = vld [vmem:[#allocation2] sm:$0xff]  ;;  %v295_v48 = vld [vmem:[#allocation2 + $0x10] sm:$0xff]  ;;  %p1143_p4 = por %p1142_p3, %p1141_p2 }
  0x32   :  { %1001 = vmatprep.subr.mxu0 %v74_v9  ;;  %v294_v44 = vld [vmem:[#allocation2 + $0x8] sm:$0xff]  ;;  %v296_v51 = vld [vmem:[#allocation2 + $0x18] sm:$0xff]  ;;  %v126_v5 = vld [vmem:[#allocation7 + $0x240] ss:$0 sm:$0xff] }
  0x33   :  { %1002 = vmatpush3.msra.mxu0 %v74_v9  ;;  %v313_v9 = vadd.s32 24, %v1215_v37  ;;  %p1144_p5 = pnand %p1143_p4, %p1137_p1 }
  0x34   :  { %1003 = vmatprep.subr.mxu0 %v71_v10 }
  0x35   :  { %1004 = vmatpush3.msra.mxu0 %v71_v10 }
  0x36   :  { %1005 = vmatprep.subr.mxu0 %v68_v11 }
  0x37   :  { %1006 = vmatpush3.msra.mxu0 %v68_v11 }
  0x38   :  { %1007 = vmatprep.subr.mxu0 %v65_v26 }
  0x39   :  { %1008 = vmatpush3.msra.mxu0 %v65_v26 }
  0x3a   :  { %1009 = vmatprep.subr.mxu0 %v62_v29 }
  0x3b   :  { %1010 = vmatpush3.msra.mxu0 %v62_v29 }
  0x3c   :  { %1011 = vmatprep.subr.mxu0 %v59_v32 }
  0x3d   :  { %1012 = vmatpush3.msra.mxu0 %v59_v32 }
  0x3e   :  { %1013 = vmatprep.subr.mxu0 %v56_v35 }
  0x3f   :  { %1014 = vmatpush3.msra.mxu0 %v56_v35 }
  0xf0   :  { %v210_v13 = vpop.f32.mrf.mxu0 }
  0xf1   :  { %v211_v14 = vadd.f32 %v210_v13, %v132_v12  ;;  %v314_v13 = vand.u32 15, %v1215_v37 }
  0xf2   :  { %v993_v15 = vpop.f32.mrf.mxu0 }
  0xf3   :  { %v214_v16 = vmax.f32 %v211_v14, 0.0  ;;  %vm1256_vm9 = vcmp.eq.s32.totalorder %v314_v13, 0 }
  0xf5   :  { %997 = vmatmul.mubr.msk.f32.vlgmr.msra.gmra.mxu1 %vm215_vm3, %v214_v16 }
  0xf6   :  { %356 = vmatpush1.msra.mxu1 %v75_v17  ;;  %403 = vmatprep.mubr.f32.mxu1 %v1169_v0 }
  0xf7   :  { %357 = vmatprep.subr.mxu1 %v73_v18 }
  0xf8   :  { %358 = vmatpush1.msra.mxu1 %v72_v19 }
  0xf9   :  { %359 = vmatprep.subr.mxu1 %v70_v20 }
  0xfa   :  { %360 = vmatpush1.msra.mxu1 %v69_v21 }
  0xfb   :  { %361 = vmatprep.subr.mxu1 %v67_v22  ;;  %v317_v22 = vand.u32 15, %v313_v9 }
  0xfc   :  { %362 = vmatpush1.msra.mxu1 %v66_v23 }
  0xfd   :  { %363 = vmatprep.subr.mxu1 %v64_v24  ;;  %vm1268_vm10 = vcmp.eq.s32.totalorder %v317_v22, 15  ;;  %v120_v22 = vld [vmem:[#allocation7 + $0x210] sm:$0xff] }
  0xfe   :  { %364 = vmatpush1.msra.mxu1 %v63_v25 }
  0xff   :  { %365 = vmatprep.subr.mxu1 %v61_v27 }
 0x100   :  { %366 = vmatpush1.msra.mxu1 %v60_v28 }
 0x101   :  { %367 = vmatprep.subr.mxu1 %v58_v30 }
 0x102   :  { %368 = vmatpush1.msra.mxu1 %v57_v31 }
 0x103   :  { %369 = vmatprep.subr.mxu1 %v55_v33 }
 0x104   :  { %370 = vmatpush1.msra.mxu1 %v54_v34 }
 0x1b5   :  { %v289_v41 = vpop.f32.mrf.mxu1 }
 0x1b6   :  { %v290_v42 = vadd.f32 %v289_v41, %v133_v38 }
 0x1b7   :  { %v998_v45 = vpop.f32.mrf.mxu1 }
 0x1b8   :  { %v300_v46 = vrot.slane %v290_v42, %v1218_v39  ;;  %v306_v47 = vrot.slane %v290_v42, %v305_v40 }
 0x1ba   :  { %v301_v49 = vadd.f32 %v300_v46, %v293_v43  ;;  %v302_v50 = vadd.f32 %v300_v46, %v294_v44  ;;  %v307_v52 = vadd.f32 %v306_v47, %v295_v48  ;;  %v308_v53 = vadd.f32 %v306_v47, %v296_v51 }
 0x1bc   :  { %936 = vmatmul.mubr.msk.f32.vlgmr.msra.gmra.mxu1 %vm326_vm4, %v301_v49  ;;  %1015 = vmatprep.mubr.msk.f32.mxu0 %vm326_vm4, %v301_v49 }
 0x1bd   :  { %1016 = vmatmul.mubr.msk.f32.vlgmr.msra.gmra.mxu0 %vm326_vm4, %v302_v50  ;;  %409 = vmatprep.mubr.f32.mxu1 %v1169_v0 }
 0x1be   :  { %1018 = vmatprep.mubr.msk.f32.mxu0 %vm326_vm4, %v307_v52 }
 0x1c0   :  { %937 = vmatmul.mubr.msk.f32.gmra.mxu1 %vm326_vm4, %v302_v50 }
 0x1c1   :  { %1019 = vmatmul.mubr.msk.f32.gmra.mxu0 %vm326_vm4, %v308_v53  ;;  %415 = vmatprep.mubr.f32.mxu1 %v1169_v0 }
 0x1c4   :  { %938 = vmatmul.mubr.msk.f32.gmra.mxu1 %vm326_vm4, %v307_v52 }
 0x1c5   :  { %421 = vmatprep.mubr.f32.mxu1 %v1169_v0 }
 0x1c8   :  { %939 = vmatmul.mubr.msk.f32.gmra.mxu1 %vm326_vm4, %v308_v53 }
 0x1c9   :  { %690 = vmatprep.mubr.f32.mxu1 %v1169_v0 }
 0x27c   :  { %v405_v54 = vpop.f32.mrf.mxu1 }
 0x27d   :  { %v1017_v56 = vpop.f32.mrf.mxu0  ;;  %v517_v4 = vrot.slane %v405_v54, 7 }
 0x27e   :  { %v407_v57 = vpop.f32.mrf.mxu1  ;;  %v535_v10 = vrot.slane %v1017_v56, 1 }
 0x27f   :  { %v494_v58 = vpop.f32.mrf.mxu0  ;;  %v513_v27 = vadd.f32 %v407_v57, %v126_v5 }
 0x280   :  { %v411_v60 = vpop.f32.mrf.mxu1  ;;  %v534_v28 = vrot.slane %v494_v58, 1 }
 0x281   :  { %v1020_v62 = vpop.f32.mrf.mxu0  ;;  %v518_v63 = vrot.slane %v411_v60, 7 }
 0x282   :  { %v413_v1 = vpop.f32.mrf.mxu1  ;;  %v537_v23 = vrot.slane %v1020_v62, 1  ;;  %v541_v43 = vsel %vm538_vm7, %v534_v28, %v535_v10 }
 0x283   :  { %v504_v3 = vpop.f32.mrf.mxu0  ;;  %v514_v11 = vadd.f32 %v413_v1, %v126_v5  ;;  %v524_v14 = vsel %vm521_vm5, %v517_v4, %v518_v63 }
 0x284   :  { %v536_v6 = vrot.slane %v504_v3, 1  ;;  %v417_v7 = vpop.f32.mrf.mxu1  ;;  %v542_v38 = vsel %vm538_vm7, %v537_v23, %v534_v28  ;;  %v119_v28 = vld [vmem:[#allocation7 + $0x208] sm:$0xff] }
 0x285   :  { %v519_v12 = vrot.slane %v417_v7, 7  ;;  %v531_v24 = vadd.f32 %v524_v14, %v514_v11  ;;  %v546_v47 = vsel %vm1268_vm10, 0.0, %v542_v38  ;;  %v113_v38 = vld [vmem:[#allocation7 + $0x1d8] sm:$0xff] }
 0x286   :  { %v419_v15 = vpop.f32.mrf.mxu1  ;;  %v540_v17 = vsel %vm538_vm7, %v535_v10, %v536_v6  ;;  %v539_v44 = vsel %vm538_vm7, %v536_v6, %v537_v23  ;;  %v122_v23 = vld [vmem:[#allocation7 + $0x220] sm:$0xff] }
 0x287   :  { %v515_v18 = vadd.f32 %v419_v15, %v126_v5  ;;  %v523_v19 = vsel %vm521_vm5, %v518_v63, %v519_v12  ;;  %v544_v29 = vsel %vm1246_vm8, 0.0, %v540_v17 }
 0x288   :  { %v528_v20 = vsel %vm1237_vm6, 0.0, %v523_v19  ;;  %v423_v21 = vpop.f32.mrf.mxu1  ;;  %v1274_v40 = vadd.f32 %v544_v29, %v531_v24  ;;  %v123_v19 = vld [vmem:[#allocation7 + $0x228] sm:$0xff]  ;;  %v118_v24 = vld [vmem:[#allocation7 + $0x200] sm:$0xff] }
 0x289   :  { %v520_v26 = vrot.slane %v423_v21, 7  ;;  %v532_v31 = vadd.f32 %v528_v20, %v515_v18  ;;  %v124_v18 = vld [vmem:[#allocation7 + $0x230] sm:$0xff]  ;;  %v125_v20 = vld [vmem:[#allocation7 + $0x238] sm:$0xff] }
 0x28a   :  { %v425_v30 = vpop.f32.mrf.mxu1  ;;  %v574_v48 = vmul.f32 %v1274_v40, %v1274_v40  ;;  %626 = vmatprep.subr.mxu1 %v124_v18  ;;  %1021 = vmatprep.subr.mxu0 %v125_v20  ;;  %v121_v21 = vld [vmem:[#allocation7 + $0x218] sm:$0xff] }
 0x28b   :  { %v525_v32 = vsel %vm521_vm5, %v520_v26, %v517_v4  ;;  %v516_v33 = vadd.f32 %v425_v30, %v126_v5  ;;  %v522_v34 = vsel %vm521_vm5, %v519_v12, %v520_v26  ;;  %v1280_v45 = vadd.f32 %v539_v44, %v532_v31  ;;  %627 = vmatpush1.msra.mxu1 %v123_v19  ;;  %v115_v30 = vld [vmem:[#allocation7 + $0x1e8] sm:$0xff]  ;;  %v114_v31 = vld [vmem:[#allocation7 + $0x1e0] sm:$0xff] }
 0x28c   :  { %v526_v35 = vsel %vm1256_vm9, 0.0, %v525_v32  ;;  %628 = vmatprep.subr.mxu1 %v121_v21  ;;  %1022 = vmatpush3.msra.mxu0 %v125_v20  ;;  %v116_v32 = vld [vmem:[#allocation7 + $0x1f0] sm:$0xff]  ;;  %v110_v44 = vld [vmem:[#allocation7 + $0x1c0] sm:$0xff] }
 0x28d   :  { %v530_v41 = vadd.f32 %v526_v35, %v513_v27  ;;  %v533_v42 = vadd.f32 %v522_v34, %v516_v33  ;;  %v575_v52 = vmul.f32 %v1280_v45, %v1280_v45  ;;  %629 = vmatpush1.msra.mxu1 %v120_v22  ;;  %1023 = vmatprep.subr.mxu0 %v122_v23  ;;  %v117_v27 = vld [vmem:[#allocation7 + $0x1f8] sm:$0xff]  ;;  %v112_v33 = vld [vmem:[#allocation7 + $0x1d0] sm:$0xff]  ;;  %v111_v35 = vld [vmem:[#allocation7 + $0x1c8] sm:$0xff] }
 0x28e   :  { %630 = vmatprep.subr.mxu1 %v118_v24  ;;  %1024 = vmatpush3.msra.mxu0 %v122_v23 }
 0x28f   :  { %v1282_v46 = vadd.f32 %v541_v43, %v530_v41  ;;  %v1288_v49 = vadd.f32 %v546_v47, %v533_v42  ;;  %631 = vmatpush1.msra.mxu1 %v117_v27  ;;  %1025 = vmatprep.subr.mxu0 %v119_v28  ;;  %v109_v42 = vld [vmem:[#allocation7 + $0x1b8] sm:$0xff]  ;;  %v108_v43 = vld [vmem:[#allocation7 + $0x1b0] sm:$0xff]  ;;  %v106_v47 = vld [vmem:[#allocation7 + $0x1a0] sm:$0xff] }
 0x290   :  { %632 = vmatprep.subr.mxu1 %v115_v30  ;;  %1026 = vmatpush3.msra.mxu0 %v119_v28  ;;  %v128_v27 = vld [vmem:[#allocation7 + $0x242] ss:$0 sm:$0xff] }
 0x291   :  { %v551_v50 = vadd.f32 %v1274_v40, %v1282_v46  ;;  %v573_v51 = vmul.f32 %v1282_v46, %v1282_v46  ;;  %v576_v55 = vmul.f32 %v1288_v49, %v1288_v49  ;;  %633 = vmatpush1.msra.mxu1 %v114_v31  ;;  %1027 = vmatprep.subr.mxu0 %v116_v32  ;;  %v129_v31 = vld [vmem:[#allocation7 + $0x243] ss:$0 sm:$0xff] }
 0x292   :  { %634 = vmatprep.subr.mxu1 %v112_v33  ;;  %1028 = vmatpush3.msra.mxu0 %v116_v32 }
 0x293   :  { %v552_v53 = vadd.f32 %v551_v50, %v1280_v45  ;;  %v577_v54 = vadd.f32 %v574_v48, %v573_v51  ;;  %635 = vmatpush1.msra.mxu1 %v111_v35  ;;  %1029 = vmatprep.subr.mxu0 %v113_v38  ;;  %v105_v48 = vld [vmem:[#allocation7 + $0x198] sm:$0xff]  ;;  %v107_v50 = vld [vmem:[#allocation7 + $0x1a8] sm:$0xff] }
 0x294   :  { %636 = vmatprep.subr.mxu1 %v109_v42  ;;  %1030 = vmatpush3.msra.mxu0 %v113_v38  ;;  %v103_v51 = vld [vmem:[#allocation7 + $0x188] sm:$0xff] }
 0x295   :  { %v553_v56 = vadd.f32 %v552_v53, %v1288_v49  ;;  %v578_v57 = vadd.f32 %v577_v54, %v575_v52  ;;  %637 = vmatpush1.msra.mxu1 %v108_v43  ;;  %1031 = vmatprep.subr.mxu0 %v110_v44  ;;  %v102_v52 = vld [vmem:[#allocation7 + $0x180] sm:$0xff]  ;;  %v104_v53 = vld [vmem:[#allocation7 + $0x190] sm:$0xff] }
 0x296   :  { %638 = vmatprep.subr.mxu1 %v106_v47  ;;  %1032 = vmatpush3.msra.mxu0 %v110_v44  ;;  %v100_v54 = vld [vmem:[#allocation7 + $0x170] sm:$0xff] }
 0x297   :  { %v554_v58 = vrot.slane %v553_v56, 4  ;;  %v579_v59 = vadd.f32 %v578_v57, %v576_v55  ;;  %639 = vmatpush1.msra.mxu1 %v105_v48  ;;  %1033 = vmatprep.subr.mxu0 %v107_v50  ;;  %v99_v55 = vld [vmem:[#allocation7 + $0x168] sm:$0xff]  ;;  %v97_v57 = vld [vmem:[#allocation7 + $0x158] sm:$0xff] }
 0x298   :  { %640 = vmatprep.subr.mxu1 %v103_v51  ;;  %1034 = vmatpush3.msra.mxu0 %v107_v50 }
 0x299   :  { %v555_v60 = vadd.f32 %v554_v58, %v553_v56  ;;  %v580_v61 = vrot.slane %v579_v59, 4  ;;  %641 = vmatpush1.msra.mxu1 %v102_v52  ;;  %1035 = vmatprep.subr.mxu0 %v104_v53  ;;  %v101_v56 = vld [vmem:[#allocation7 + $0x178] sm:$0xff]  ;;  %v96_v58 = vld [vmem:[#allocation7 + $0x150] sm:$0xff] }
 0x29a   :  { %642 = vmatprep.subr.mxu1 %v100_v54  ;;  %1036 = vmatpush3.msra.mxu0 %v104_v53 }
 0x29b   :  { %v556_v62 = vrot.slane %v555_v60, 2  ;;  %v581_v63 = vadd.f32 %v580_v61, %v579_v59  ;;  %643 = vmatpush1.msra.mxu1 %v99_v55  ;;  %1037 = vmatprep.subr.mxu0 %v101_v56  ;;  %v98_v59 = vld [vmem:[#allocation7 + $0x160] sm:$0xff]  ;;  %v93_v61 = vld [vmem:[#allocation7 + $0x138] sm:$0xff] }
 0x29c   :  { %644 = vmatprep.subr.mxu1 %v97_v57  ;;  %1038 = vmatpush3.msra.mxu0 %v101_v56 }
 0x29d   :  { %v557_v1 = vadd.f32 %v556_v62, %v555_v60  ;;  %v582_v2 = vrot.slane %v581_v63, 2  ;;  %v94_v60 = vld [vmem:[#allocation7 + $0x140] sm:$0xff]  ;;  %645 = vmatpush1.msra.mxu1 %v96_v58  ;;  %1039 = vmatprep.subr.mxu0 %v98_v59  ;;  %v95_v62 = vld [vmem:[#allocation7 + $0x148] sm:$0xff] }
 0x29e   :  { %646 = vmatprep.subr.mxu1 %v94_v60  ;;  %1040 = vmatpush3.msra.mxu0 %v98_v59  ;;  %v127_v60 = vld [vmem:[#allocation7 + $0x241] ss:$0 sm:$0xff] }
 0x29f   :  { %v558_v3 = vrot.slane %v557_v1, 1  ;;  %v583_v4 = vadd.f32 %v582_v2, %v581_v63  ;;  %v91_v63 = vld [vmem:[#allocation7 + $0x128] sm:$0xff]  ;;  %647 = vmatpush1.msra.mxu1 %v93_v61  ;;  %1041 = vmatprep.subr.mxu0 %v95_v62  ;;  %v92_v2 = vld [vmem:[#allocation7 + $0x130] sm:$0xff] }
 0x2a0   :  { %648 = vmatprep.subr.mxu1 %v91_v63  ;;  %1042 = vmatpush3.msra.mxu0 %v95_v62 }
 0x2a1   :  { %v559_v5 = vadd.f32 %v558_v3, %v557_v1  ;;  %v584_v6 = vrot.slane %v583_v4, 1  ;;  %v90_v1 = vld [vmem:[#allocation7 + $0x120] sm:$0xff]  ;;  %v88_v3 = vld [vmem:[#allocation7 + $0x110] sm:$0xff]  ;;  %1043 = vmatprep.subr.mxu0 %v92_v2 }
 0x2a2   :  { %649 = vmatpush1.msra.mxu1 %v90_v1  ;;  %1044 = vmatpush3.msra.mxu0 %v92_v2 }
 0x2a3   :  { %560 = vrot.lane.b32.xlu0 %v559_v5, %s1165_s21  ;;  %v585_v7 = vadd.f32 %v584_v6, %v583_v4  ;;  %v87_v4 = vld [vmem:[#allocation7 + $0x108] sm:$0xff]  ;;  %v85_v6 = vld [vmem:[#allocation7 + $0xf8] sm:$0xff]  ;;  %650 = vmatprep.subr.mxu1 %v88_v3 }
 0x2a4   :  { %651 = vmatpush1.msra.mxu1 %v87_v4 }
 0x2a5   :  { %652 = vmatprep.subr.mxu1 %v85_v6 }
 0x2a7   :  { %586 = vrot.lane.b32.xlu0 %v585_v7, %s1165_s21 }
 0x315   :  { %v561_v9 = vpop.permute.xlu0 %560 }
 0x316   :  { %v562_v10 = vadd.f32 %v561_v9, %v559_v5  ;;  %v89_v5 = vld [vmem:[#allocation7 + $0x118] sm:$0xff]  ;;  %v86_v9 = vld [vmem:[#allocation7 + $0x100] sm:$0xff] }
 0x317   :  { %1045 = vmatprep.subr.mxu0 %v89_v5 }
 0x318   :  { %563 = vrot.lane.b32.xlu1 %v562_v10, %s1171_s0  ;;  %1046 = vmatpush3.msra.mxu0 %v89_v5 }
 0x319   :  { %v587_v11 = vpop.permute.xlu0 %586  ;;  %1047 = vmatprep.subr.mxu0 %v86_v9 }
 0x31a   :  { %v588_v12 = vadd.f32 %v587_v11, %v585_v7  ;;  %v84_v7 = vld [vmem:[#allocation7 + $0xf0] sm:$0xff]  ;;  %v81_v11 = vld [vmem:[#allocation7 + $0xd8] sm:$0xff]  ;;  %1048 = vmatpush3.msra.mxu0 %v86_v9 }
 0x31b   :  { %653 = vmatpush1.msra.mxu1 %v84_v7 }
 0x31c   :  { %589 = vrot.lane.b32.xlu1 %v588_v12, %s1171_s0 }
 0x38a   :  { %v564_v13 = vpop.permute.xlu1 %563 }
 0x38b   :  { %v565_v14 = vadd.f32 %v564_v13, %v562_v10  ;;  %v82_v10 = vld [vmem:[#allocation7 + $0xe0] sm:$0xff]  ;;  %v79_v13 = vld [vmem:[#allocation7 + $0xc8] sm:$0xff] }
 0x38c   :  { %654 = vmatprep.subr.mxu1 %v82_v10 }
 0x38d   :  { %566 = vrot.lane.b32.xlu0 %v565_v14, %s1172_s2  ;;  %655 = vmatpush1.msra.mxu1 %v81_v11 }
 0x38e   :  { %v590_v15 = vpop.permute.xlu1 %589  ;;  %656 = vmatprep.subr.mxu1 %v79_v13 }
 0x38f   :  { %v591_v17 = vadd.f32 %v590_v15, %v588_v12  ;;  %v83_v12 = vld [vmem:[#allocation7 + $0xe8] sm:$0xff]  ;;  %v80_v15 = vld [vmem:[#allocation7 + $0xd0] sm:$0xff] }
 0x390   :  { %1049 = vmatprep.subr.mxu0 %v83_v12 }
 0x391   :  { %592 = vrot.lane.b32.xlu1 %v591_v17, %s1172_s2  ;;  %1050 = vmatpush3.msra.mxu0 %v83_v12 }
 0x392   :  { %1051 = vmatprep.subr.mxu0 %v80_v15 }
 0x393   :  { %1052 = vmatpush3.msra.mxu0 %v80_v15 }
 0x3ff   :  { %v567_v26 = vpop.permute.xlu0 %566 }
 0x400   :  { %v1306_v29 = vadd.f32 %v567_v26, %v565_v14  ;;  %v78_v14 = vld [vmem:[#allocation7 + $0xc0] sm:$0xff] }
 0x401   :  { %657 = vmatpush1.msra.mxu1 %v78_v14 }
 0x402   :  { %569 = vrot.lane.b32.xlu0 %v1306_v29, %s1173_s30 }
 0x403   :  { %v593_v34 = vpop.permute.xlu1 %592 }
 0x404   :  { %v1310_v41 = vadd.f32 %v593_v34, %v591_v17 }
 0x406   :  { %595 = vrot.lane.b32.xlu1 %v1310_v41, %s1173_s30 }
 0x474   :  { %v570_v17 = vpop.permute.xlu0 %569 }
 0x475   :  { %v571_v18 = vadd.f32 %v570_v17, %v1306_v29 }
 0x477   :  { %v572_v19 = vmul.f32 0.001953125, %v571_v18 }
 0x478   :  { %v596_v20 = vpop.permute.xlu1 %595 }
 0x479   :  { %v597_v21 = vadd.f32 %v596_v20, %v1310_v41  ;;  %v599_v22 = vmul.f32 %v572_v19, %v572_v19 }
 0x47b   :  { %v598_v23 = vmul.f32 0.001953125, %v597_v21 }
 0x47d   :  { %v600_v24 = vsub.f32 %v598_v23, %v599_v22 }
 0x47f   :  { %v601_v26 = vadd.f32 1e-05, %v600_v24 }
 0x481   :  { %1072 = vrsqrt.f32 %v601_v26 }
 0x48e   :  { %v1073_v28 = vpop.eup %1072 }
 0x48f   :  { %v603_v30 = vmul.f32 %v1073_v28, %v128_v27 }
 0x491   :  { %v604_v32 = vmul.f32 %v603_v30, %v572_v19  ;;  %v609_v33 = vrot.slane %v603_v30, %v1218_v39 }
 0x493   :  { %v605_v34 = vsub.f32 %v129_v31, %v604_v32  ;;  %v610_v35 = vmul.f32 %v609_v33, %v1282_v46  ;;  %v611_v38 = vmul.f32 %v609_v33, %v1274_v40  ;;  %v612_v41 = vmul.f32 %v609_v33, %v1280_v45 }
 0x494   :  { %v613_v47 = vmul.f32 %v609_v33, %v1288_v49 }
 0x495   :  { %v617_v29 = vrot.slane %v605_v34, %v1218_v39 }
 0x497   :  { %v618_v42 = vadd.f32 %v617_v29, %v610_v35  ;;  %v619_v43 = vadd.f32 %v617_v29, %v611_v38  ;;  %v620_v44 = vadd.f32 %v617_v29, %v612_v41  ;;  %v621_v51 = vadd.f32 %v617_v29, %v613_v47 }
 0x499   :  { %v622_v48 = vmax.f32 %v618_v42, 0.0  ;;  %v623_v50 = vmax.f32 %v619_v43, 0.0  ;;  %v624_v52 = vmax.f32 %v620_v44, 0.0  ;;  %v625_v46 = vmax.f32 %v621_v51, 0.0 }
 0x49b   :  { %691 = vmatmul.mubr.f32.vlgmr.msra.gmra.mxu1 %v622_v48  ;;  %1053 = vmatprep.mubr.f32.mxu0 %v622_v48 }
 0x49c   :  { %1054 = vmatmul.mubr.f32.vlgmr.msra.gmra.mxu0 %v623_v50  ;;  %696 = vmatprep.mubr.f32.mxu1 %v1169_v0 }
 0x49d   :  { %1056 = vmatprep.mubr.f32.mxu0 %v624_v52 }
 0x49f   :  { %697 = vmatmul.mubr.f32.gmra.mxu1 %v623_v50 }
 0x4a0   :  { %1057 = vmatmul.mubr.f32.gmra.mxu0 %v625_v46  ;;  %702 = vmatprep.mubr.f32.mxu1 %v1169_v0 }
 0x4a3   :  { %703 = vmatmul.mubr.f32.gmra.mxu1 %v624_v52 }
 0x4a4   :  { %708 = vmatprep.mubr.f32.mxu1 %v1169_v0 }
 0x4a7   :  { %709 = vmatmul.mubr.f32.gmra.mxu1 %v625_v46 }
 0x55b   :  { %v692_v40 = vpop.f32.mrf.mxu1 }
 0x55c   :  { %v1055_v45 = vpop.f32.mrf.mxu0  ;;  %v804_v59 = vrot.slane %v692_v40, 7 }
 0x55d   :  { %v694_v49 = vpop.f32.mrf.mxu1  ;;  %v821_v63 = vrot.slane %v1055_v45, 1 }
 0x55e   :  { %v781_v53 = vpop.f32.mrf.mxu0  ;;  %v800_v13 = vadd.f32 %v694_v49, %v127_v60 }
 0x55f   :  { %v698_v54 = vpop.f32.mrf.mxu1  ;;  %v820_v14 = vrot.slane %v781_v53, 1 }
 0x560   :  { %v1058_v55 = vpop.f32.mrf.mxu0  ;;  %v805_v56 = vrot.slane %v698_v54, 7 }
 0x561   :  { %v700_v57 = vpop.f32.mrf.mxu1  ;;  %v823_v10 = vrot.slane %v1058_v55, 1  ;;  %v826_v26 = vsel %vm538_vm7, %v820_v14, %v821_v63 }
 0x562   :  { %v791_v58 = vpop.f32.mrf.mxu0  ;;  %v801_v1 = vadd.f32 %v700_v57, %v127_v60  ;;  %v810_v0 = vsel %vm521_vm5, %v804_v59, %v805_v56 }
 0x563   :  { %v822_v61 = vrot.slane %v791_v58, 1  ;;  %v704_v62 = vpop.f32.mrf.mxu1  ;;  %v827_v22 = vsel %vm538_vm7, %v823_v10, %v820_v14 }
 0x564   :  { %v806_v2 = vrot.slane %v704_v62, 7  ;;  %v817_v11 = vadd.f32 %v810_v0, %v801_v1  ;;  %v831_v25 = vsel %vm1268_vm10, 0.0, %v827_v22 }
 0x565   :  { %v706_v3 = vpop.f32.mrf.mxu1  ;;  %v825_v4 = vsel %vm538_vm7, %v821_v63, %v822_v61  ;;  %v824_v27 = vsel %vm538_vm7, %v822_v61, %v823_v10 }
 0x566   :  { %v802_v5 = vadd.f32 %v706_v3, %v127_v60  ;;  %v809_v6 = vsel %vm521_vm5, %v805_v56, %v806_v2  ;;  %v829_v15 = vsel %vm1246_vm8, 0.0, %v825_v4 }
 0x567   :  { %v814_v7 = vsel %vm1237_vm6, 0.0, %v809_v6  ;;  %v710_v9 = vpop.f32.mrf.mxu1  ;;  %v1343_v23 = vadd.f32 %v829_v15, %v817_v11  ;;  %v131_v15 = vld [vmem:[#allocation7 + $0x245] ss:$0 sm:$0xff] }
 0x568   :  { %v807_v12 = vrot.slane %v710_v9, 7  ;;  %v818_v18 = vadd.f32 %v814_v7, %v802_v5 }
 0x569   :  { %v712_v17 = vpop.f32.mrf.mxu1  ;;  %v859_v31 = vmul.f32 %v1343_v23, %v1343_v23 }
 0x56a   :  { %v811_v19 = vsel %vm521_vm5, %v807_v12, %v804_v59  ;;  %v803_v20 = vadd.f32 %v712_v17, %v127_v60  ;;  %v808_v21 = vsel %vm521_vm5, %v806_v2, %v807_v12  ;;  %v1349_v28 = vadd.f32 %v824_v27, %v818_v18  ;;  %v130_v12 = vld [vmem:[#allocation7 + $0x244] ss:$0 sm:$0xff] }
 0x56b   :  { %v812_v8 = vsel %vm1256_vm9, 0.0, %v811_v19 }
 0x56c   :  { %v816_v24 = vadd.f32 %v812_v8, %v800_v13  ;;  %v819_v16 = vadd.f32 %v808_v21, %v803_v20  ;;  %v860_v35 = vmul.f32 %v1349_v28, %v1349_v28 }
 0x56e   :  { %v832_v30 = vadd.f32 %v826_v26, %v816_v24  ;;  %v835_v32 = vadd.f32 %v831_v25, %v819_v16 }
 0x570   :  { %v836_v33 = vadd.f32 %v1343_v23, %v832_v30  ;;  %v858_v34 = vmul.f32 %v832_v30, %v832_v30  ;;  %v861_v38 = vmul.f32 %v835_v32, %v835_v32 }
 0x572   :  { %v837_v29 = vadd.f32 %v836_v33, %v1349_v28  ;;  %v862_v37 = vadd.f32 %v859_v31, %v858_v34 }
 0x574   :  { %v838_v41 = vadd.f32 %v837_v29, %v835_v32  ;;  %v863_v42 = vadd.f32 %v862_v37, %v860_v35 }
 0x576   :  { %v839_v43 = vrot.slane %v838_v41, 4  ;;  %v864_v44 = vadd.f32 %v863_v42, %v861_v38 }
 0x578   :  { %v840_v36 = vadd.f32 %v839_v43, %v838_v41  ;;  %v865_v47 = vrot.slane %v864_v44, 4 }
 0x57a   :  { %v841_v48 = vrot.slane %v840_v36, 2  ;;  %v866_v50 = vadd.f32 %v865_v47, %v864_v44 }
 0x57c   :  { %v842_v51 = vadd.f32 %v841_v48, %v840_v36  ;;  %v867_v52 = vrot.slane %v866_v50, 2 }
 0x57e   :  { %v843_v46 = vrot.slane %v842_v51, 1  ;;  %v868_v40 = vadd.f32 %v867_v52, %v866_v50 }
 0x580   :  { %v844_v45 = vadd.f32 %v843_v46, %v842_v51  ;;  %v869_v49 = vrot.slane %v868_v40, 1 }
 0x582   :  { %845 = vrot.lane.b32.xlu0 %v844_v45, %s1165_s21  ;;  %v870_v53 = vadd.f32 %v869_v49, %v868_v40 }
 0x584   :  { %871 = vrot.lane.b32.xlu1 %v870_v53, %s1165_s21 }
 0x5f4   :  { %v846_v54 = vpop.permute.xlu0 %845 }
 0x5f5   :  { %v847_v55 = vadd.f32 %v846_v54, %v844_v45 }
 0x5f6   :  { %v872_v56 = vpop.permute.xlu1 %871 }
 0x5f7   :  { %v873_v57 = vadd.f32 %v872_v56, %v870_v53  ;;  %848 = vrot.lane.b32.xlu0 %v847_v55, %s1171_s0 }
 0x5f9   :  { %874 = vrot.lane.b32.xlu1 %v873_v57, %s1171_s0 }
 0x669   :  { %v849_v58 = vpop.permute.xlu0 %848 }
 0x66a   :  { %v850_v59 = vadd.f32 %v849_v58, %v847_v55 }
 0x66b   :  { %v875_v60 = vpop.permute.xlu1 %874 }
 0x66c   :  { %v876_v61 = vadd.f32 %v875_v60, %v873_v57  ;;  %851 = vrot.lane.b32.xlu0 %v850_v59, %s1172_s2 }
 0x66e   :  { %877 = vrot.lane.b32.xlu1 %v876_v61, %s1172_s2 }
 0x6de   :  { %v852_v62 = vpop.permute.xlu0 %851 }
 0x6df   :  { %v853_v63 = vadd.f32 %v852_v62, %v850_v59 }
 0x6e0   :  { %v878_v1 = vpop.permute.xlu1 %877 }
 0x6e1   :  { %v879_v2 = vadd.f32 %v878_v1, %v876_v61  ;;  %854 = vrot.lane.b32.xlu0 %v853_v63, %s1173_s30 }
 0x6e3   :  { %880 = vrot.lane.b32.xlu1 %v879_v2, %s1173_s30 }
 0x753   :  { %v855_v0 = vpop.permute.xlu0 %854 }
 0x754   :  { %v856_v3 = vadd.f32 %v855_v0, %v853_v63 }
 0x755   :  { %v881_v4 = vpop.permute.xlu1 %880 }
 0x756   :  { %v857_v5 = vmul.f32 0.001953125, %v856_v3  ;;  %v882_v6 = vadd.f32 %v881_v4, %v879_v2 }
 0x758   :  { %v884_v7 = vmul.f32 %v857_v5, %v857_v5  ;;  %v883_v9 = vmul.f32 0.001953125, %v882_v6 }
 0x75a   :  { %v885_v10 = vsub.f32 %v883_v9, %v884_v7 }
 0x75c   :  { %v886_v11 = vadd.f32 1e-05, %v885_v10 }
 0x75e   :  { %1074 = vrsqrt.f32 %v886_v11 }
 0x76b   :  { %v1075_v13 = vpop.eup %1074 }
 0x76c   :  { %v888_v14 = vmul.f32 %v1075_v13, %v130_v12 }
 0x76e   :  { %v889_v17 = vmul.f32 %v888_v14, %v857_v5  ;;  %v894_v18 = vrot.slane %v888_v14, %v1218_v39 }
 0x770   :  { %v890_v19 = vsub.f32 %v131_v15, %v889_v17  ;;  %v895_v20 = vmul.f32 %v894_v18, %v832_v30  ;;  %v896_v21 = vmul.f32 %v894_v18, %v1343_v23  ;;  %v897_v8 = vmul.f32 %v894_v18, %v1349_v28 }
 0x771   :  { %v898_v22 = vmul.f32 %v894_v18, %v835_v32 }
 0x772   :  { %v902_v24 = vrot.slane %v890_v19, %v1218_v39 }
 0x774   :  { %v903_v16 = vadd.f32 %v902_v24, %v895_v20  ;;  %v904_v26 = vadd.f32 %v902_v24, %v896_v21  ;;  %v905_v27 = vadd.f32 %v902_v24, %v897_v8  ;;  %v906_v25 = vadd.f32 %v902_v24, %v898_v22 }
 0x776   :  { %v907_v31 = vmax.f32 %v903_v16, 0.0  ;;  %v908_v33 = vmax.f32 %v904_v26, 0.0  ;;  %v909_v34 = vmax.f32 %v905_v27, 0.0  ;;  %v910_v35 = vmax.f32 %v906_v25, 0.0 }
 0x778   :  { %911 = vst [vmem:[#allocation8] sm:$0xff] %v907_v31  ;;  %912 = vst [vmem:[#allocation8 + $0x8] sm:$0xff] %v908_v33 }
 0x779   :  { %913 = vst [vmem:[#allocation8 + $0x10] sm:$0xff] %v909_v34  ;;  %914 = vst [vmem:[#allocation8 + $0x18] sm:$0xff] %v910_v35 }
 0x77a   :  { %1147 = shalt.err (!%p1144_p5)
}
 0x77b   :  { %926 = dma.vmem_to_hbm [thread:$0]  %s921_s5, 512, %s1380_s3, [#allocation4], %s1164_s20, %s1164_s20, %s1165_s21  }
 0x77c   :  { %1160 = dma.done.wait [#allocation4], 512  }
 0x77d   :  { %1161 = vsyncadd [#allocation4], 4294966784 }
 0x77e   :  { %930 = vsyncpa [#allocation3], 1 }
 0x77f   :  { %931 = vsyncpa [#allocation6], 1 }
 0x780   :  { %932 = vsyncpa [#allocation4], 1 }

</bundles_post_ra>
